<compile_context>
chip_gen: v6e
topology: v6e:2x2x1
jax: 0.10.0
libtpu: 0.0.40
codegen_flags: <defaults>
</compile_context>

<pallas_src>
import math
import jax
import jax.numpy as jnp
from jax import lax
from jax.experimental import pallas as pl
from jax.experimental.pallas import tpu as pltpu


# ----------------------------------------------------------------------------
# Weight folding helpers (run once at module init)
# ----------------------------------------------------------------------------
def _block_expand(W, V):
    """W: (Cout, Cin) 1x1-conv weight -> (V*Cin, Cout*V) dense weight such that
    (x2 @ Wbig)[t, c*V + v] == sum_ci x[ci, t, v] * W[c, ci], i.e. the result is
    already in PyTorch's permute(0,2,1,3).reshape(N,T,-1) channel-major order."""
    Cout, Cin = W.shape
    eye = jnp.eye(V, dtype=W.dtype)
    big = eye[:, None, None, :] * jnp.transpose(W)[None, :, :, None]  # (V,Cin,Cout,V)
    return big.reshape(V * Cin, Cout * V)


def _bias_expand(b, V):
    # bbig[c*V + v] = b[c]
    return jnp.repeat(b, V)


# ----------------------------------------------------------------------------
# LocPositionalEncoder equivalent (dropout p=0.0 is identity)
# ----------------------------------------------------------------------------
def loc_positional_encoding(S, d_model):
    pos = jnp.arange(S, dtype=jnp.float32)[:, None]            # (S, 1)
    idx = jnp.arange(d_model, dtype=jnp.float32)[None, :]      # (1, d)
    angles = pos / (10000.0 ** (idx / d_model))
    pe = jnp.where((jnp.arange(d_model) % 2 == 0)[None, :],
                   jnp.sin(angles), jnp.cos(angles))
    return pe[None]                                            # (1, S, d)


# ----------------------------------------------------------------------------
# Fused kernel: per grid step, Nb batches of (projection -> causal attention)
# ----------------------------------------------------------------------------
def _make_fused_kernel(nb, has_pe):
    def kernel(x_ref, w_ref, b_ref, mask_ref, *rest):
        if has_pe:
            pe_ref, o_ref = rest
        else:
            (o_ref,) = rest
        mask = mask_ref[...]                        # (T, T) f32 additive causal bias
        wq, wk, wv = w_ref[0], w_ref[1], w_ref[2]   # (V*Cin, D), stay resident in VMEM
        bq, bk, bv = b_ref[0], b_ref[1], b_ref[2]   # (1, D) f32

        for b in range(nb):                         # small static unroll over packed batches
            xb = x_ref[b]                           # (T, V*Cin), input dtype
            # Projections: MXU matmuls with f32 accumulate; 1/sqrt(D) is folded
            # into wq/bq, so no score scaling later.
            q = jnp.dot(xb, wq, preferred_element_type=jnp.float32) + bq
            k = jnp.dot(xb, wk, preferred_element_type=jnp.float32) + bk
            v = jnp.dot(xb, wv, preferred_element_type=jnp.float32) + bv
            if has_pe:
                q = q + pe_ref[0]                   # PE / sqrt(D)
                k = k + pe_ref[1]
                v = v + pe_ref[1]
            # Feed the MXU in the input dtype (bf16 stays bf16); scores in f32.
            q = q.astype(xb.dtype)
            k = k.astype(xb.dtype)
            v = v.astype(xb.dtype)
            # scores = q @ k^T without materializing the transpose.
            s = lax.dot_general(q, k, (((1,), (1,)), ((), ())),
                                preferred_element_type=jnp.float32)   # (T, T)
            s = s + mask
            m = jnp.max(s, axis=-1, keepdims=True)
            p = jnp.exp(s - m)
            l = jnp.sum(p, axis=-1, keepdims=True)
            o = jnp.dot(p.astype(v.dtype), v, preferred_element_type=jnp.float32)
            o = o * pl.reciprocal(l, approx=True)   # EUP reciprocal, frees the VALU
            o_ref[b] = o.astype(o_ref.dtype)

    return kernel


# ----------------------------------------------------------------------------
# Module wrapper
# ----------------------------------------------------------------------------
class TemporalAttentionPallas:
    def __init__(self, in_channels, out_channels, T, n_joint,
                 inherent=False, is_pe=0, key=None, max_batch_block=8):
        self.in_channels = in_channels
        self.out_channels = out_channels
        self.n_joint = n_joint
        self.is_pe = is_pe
        self.inherent = inherent
        self.max_batch_block = max_batch_block
        if key is None:
            key = jax.random.PRNGKey(0)
        ks = jax.random.split(key, 6)
        bound = 1.0 / math.sqrt(in_channels)  # 1x1 conv fan-in
        # Raw conv params (C_out, C_in) / (C_out,)  -- kept for the reference.
        self.Wq = jax.random.uniform(ks[0], (out_channels, in_channels), jnp.float32, -bound, bound)
        self.Wk = jax.random.uniform(ks[1], (out_channels, in_channels), jnp.float32, -bound, bound)
        self.Wv = jax.random.uniform(ks[2], (out_channels, in_channels), jnp.float32, -bound, bound)
        self.bq = jax.random.uniform(ks[3], (out_channels,), jnp.float32, -bound, bound)
        self.bk = jax.random.uniform(ks[4], (out_channels,), jnp.float32, -bound, bound)
        self.bv = jax.random.uniform(ks[5], (out_channels,), jnp.float32, -bound, bound)

        # Precomputed (at init, not per call) block-expanded projection weights.
        V = n_joint
        D = out_channels * V
        inv = 1.0 / math.sqrt(D)
        self.w_stack = jnp.stack([_block_expand(self.Wq, V) * inv,   # scale folded into Q
                                  _block_expand(self.Wk, V),
                                  _block_expand(self.Wv, V)])        # (3, V*Cin, D)
        self.b_stack = jnp.stack([_bias_expand(self.bq, V) * inv,
                                  _bias_expand(self.bk, V),
                                  _bias_expand(self.bv, V)])[:, None, :]  # (3, 1, D) f32

        if self.inherent:
            # NOTE: the `inherent` branch (PA * alpha + mat) only modifies the
            # attention matrix `mat`, which forward() never returns; the
            # returned `out` is unaffected, so it is intentionally a no-op.
            self.PA = jnp.eye(T, dtype=jnp.float32)
            self.alpha = jnp.ones((1,), dtype=jnp.float32)

    def _pick_nb(self, N):
        for nb in range(min(N, self.max_batch_block), 0, -1):
            if N % nb == 0:
                return nb
        return 1

    def __call__(self, x):
        # x: (N, C_in, T, V) -- PyTorch NCHW
        N, Cin, T, V = x.shape
        assert Cin == self.in_channels and V == self.n_joint
        D = self.out_channels * V

        # Single input relayout: x2[n, t, v*Cin + ci] = x[n, ci, t, v]
        x2 = jnp.transpose(x, (0, 2, 3, 1)).reshape(N, T, V * Cin)
        w = self.w_stack.astype(x.dtype)
        b = self.b_stack.astype(jnp.float32)

        # Additive causal mask, computed once per call (tiny (T,T) f32).
        r = jnp.arange(T)
        mask = jnp.where(r[None, :] > r[:, None],
                         jnp.float32(-1000000000.0), jnp.float32(0.0))

        nb = self._pick_nb(N)
        grid = (N // nb,)

        in_specs = [
            pl.BlockSpec((nb, T, V * Cin), lambda i: (i, 0, 0)),
            pl.BlockSpec((3, V * Cin, D), lambda i: (0, 0, 0)),
            pl.BlockSpec((3, 1, D), lambda i: (0, 0, 0)),
            pl.BlockSpec((T, T), lambda i: (0, 0)),
        ]
        args = [x2, w, b, mask]
        if self.is_pe:
            pe = loc_positional_encoding(T, D)[0].astype(x.dtype)      # (T, D)
            pe_q = (pe * (1.0 / math.sqrt(D))).astype(x.dtype)         # scaled copy for Q
            pe_stack = jnp.stack([pe_q, pe])                           # (2, T, D)
            in_specs.append(pl.BlockSpec((2, T, D), lambda i: (0, 0, 0)))
            args.append(pe_stack)

        kernel = _make_fused_kernel(nb, bool(self.is_pe))
        out = pl.pallas_call(
            kernel,
            out_shape=jax.ShapeDtypeStruct((N, T, D), x.dtype),
            grid=grid,
            in_specs=in_specs,
            out_specs=pl.BlockSpec((nb, T, D), lambda i: (i, 0, 0)),
            compiler_params=pltpu.CompilerParams(
                dimension_semantics=("parallel",)),
        )(*args)
        return out


# ----------------------------------------------------------------------------
# Pure-JAX reference (mirrors the PyTorch forward) for verification
# ----------------------------------------------------------------------------
def reference_forward(x, mod):
    N, Cin, T, V = x.shape

    def conv1x1(x, W, b):
        return jnp.einsum('nctv,oc->notv', x, W) + b[None, :, None, None]

    Q = conv1x1(x, mod.Wq, mod.bq)
    K = conv1x1(x, mod.Wk, mod.bk)
    Vv = conv1x1(x, mod.Wv, mod.bv)
    Q = jnp.transpose(Q, (0, 2, 1, 3)).reshape(N, T, -1)
    K = jnp.transpose(K, (0, 2, 1, 3)).reshape(N, T, -1)
    Vv = jnp.transpose(Vv, (0, 2, 1, 3)).reshape(N, T, -1)
    if mod.is_pe:
        PE = loc_positional_encoding(T, Q.shape[-1]).astype(x.dtype)
        Q, K, Vv = Q + PE, K + PE, Vv + PE
    D = Q.shape[-1]
    scores = jnp.einsum('ntd,nsd->nts', Q, K) / math.sqrt(D)
    r = jnp.arange(T)
    scores = jnp.where((r[None, :] > r[:, None])[None], -1000000000.0, scores)
    p = jax.nn.softmax(scores, axis=-1)
    return jnp.einsum('nts,nsd->ntd', p, Vv)


if __name__ == "__main__":
    # Small shapes: N=2 batch, C_in=4, T=8 frames, V=4 joints, C_out=8 (D=32)
    key = jax.random.PRNGKey(0)
    k_x, k_p = jax.random.split(key)
    N, Cin, T, V, Cout = 2, 4, 8, 4, 8
    x = jax.random.normal(k_x, (N, Cin, T, V), dtype=jnp.float32)

    # Default path (is_pe=0)
    mod = TemporalAttentionPallas(in_channels=Cin, out_channels=Cout,
                                  T=T, n_joint=V, inherent=False, is_pe=0, key=k_p)
    out = jax.block_until_ready(mod(x))
    ref = reference_forward(x, mod)
    assert out.shape == (N, T, Cout * V)
    # tolerance leaves headroom for the EUP approx reciprocal (~1e-3 relative)
    assert jnp.allclose(out, ref, atol=5e-3, rtol=5e-3), "mismatch vs reference (is_pe=0)"

    # Positional-encoding path (is_pe=1), PE added to Q/K/V inside the kernel
    mod_pe = TemporalAttentionPallas(in_channels=Cin, out_channels=Cout,
                                     T=T, n_joint=V, inherent=False, is_pe=1, key=k_p)
    out_pe = jax.block_until_ready(mod_pe(x))
    ref_pe = reference_forward(x, mod_pe)
    assert jnp.allclose(out_pe, ref_pe, atol=5e-3, rtol=5e-3), "mismatch vs reference (is_pe=1)"

    print("KERNEL_OK")
</pallas_src>

<mosaic_0001>
module attributes {stable_mosaic.version = 11 : i64} {
  func.func @kernel(%arg0: i32, %arg1: memref<2x8x16xf32, #tpu.memory_space<vmem>>, %arg2: memref<3x16x32xf32, #tpu.memory_space<vmem>>, %arg3: memref<3x1x32xf32, #tpu.memory_space<vmem>>, %arg4: memref<8x8xf32, #tpu.memory_space<vmem>>, %arg5: memref<2x8x32xf32, #tpu.memory_space<vmem>>) attributes {dimension_semantics = [#tpu.dimension_semantics<parallel>], iteration_bounds = array<i64: 1>, scalar_prefetch = 0 : i64, scratch_operands = 0 : i64, tpu.core_type = #tpu.core_type<tc>, window_params = [{transform_indices = @transform_0, window_bounds = array<i64: 2, 8, 16>}, {pipeline_mode = #tpu.pipeline_mode<synchronous>, transform_indices = @transform_1, window_bounds = array<i64: 3, 16, 32>}, {pipeline_mode = #tpu.pipeline_mode<synchronous>, transform_indices = @transform_2, window_bounds = array<i64: 3, 1, 32>}, {pipeline_mode = #tpu.pipeline_mode<synchronous>, transform_indices = @transform_3, window_bounds = array<i64: 8, 8>}, {transform_indices = @transform_4, window_bounds = array<i64: 2, 8, 32>}]} {
    %c0 = arith.constant 0 : index
    %c0_0 = arith.constant 0 : index
    %0 = vector.load %arg4[%c0, %c0_0] : memref<8x8xf32, #tpu.memory_space<vmem>>, vector<8x8xf32>
    %c0_1 = arith.constant 0 : index
    %c0_2 = arith.constant 0 : index
    %c0_3 = arith.constant 0 : index
    %1 = vector.load %arg2[%c0_1, %c0_2, %c0_3] : memref<3x16x32xf32, #tpu.memory_space<vmem>>, vector<1x16x32xf32>
    %2 = vector.shape_cast %1 : vector<1x16x32xf32> to vector<16x32xf32>
    %c1 = arith.constant 1 : index
    %c0_4 = arith.constant 0 : index
    %c0_5 = arith.constant 0 : index
    %3 = vector.load %arg2[%c1, %c0_4, %c0_5] : memref<3x16x32xf32, #tpu.memory_space<vmem>>, vector<1x16x32xf32>
    %4 = vector.shape_cast %3 : vector<1x16x32xf32> to vector<16x32xf32>
    %c2 = arith.constant 2 : index
    %c0_6 = arith.constant 0 : index
    %c0_7 = arith.constant 0 : index
    %5 = vector.load %arg2[%c2, %c0_6, %c0_7] : memref<3x16x32xf32, #tpu.memory_space<vmem>>, vector<1x16x32xf32>
    %6 = vector.shape_cast %5 : vector<1x16x32xf32> to vector<16x32xf32>
    %c0_8 = arith.constant 0 : index
    %c0_9 = arith.constant 0 : index
    %c0_10 = arith.constant 0 : index
    %7 = vector.load %arg3[%c0_8, %c0_9, %c0_10] : memref<3x1x32xf32, #tpu.memory_space<vmem>>, vector<1x1x32xf32>
    %8 = vector.shape_cast %7 : vector<1x1x32xf32> to vector<1x32xf32>
    %c1_11 = arith.constant 1 : index
    %c0_12 = arith.constant 0 : index
    %c0_13 = arith.constant 0 : index
    %9 = vector.load %arg3[%c1_11, %c0_12, %c0_13] : memref<3x1x32xf32, #tpu.memory_space<vmem>>, vector<1x1x32xf32>
    %10 = vector.shape_cast %9 : vector<1x1x32xf32> to vector<1x32xf32>
    %c2_14 = arith.constant 2 : index
    %c0_15 = arith.constant 0 : index
    %c0_16 = arith.constant 0 : index
    %11 = vector.load %arg3[%c2_14, %c0_15, %c0_16] : memref<3x1x32xf32, #tpu.memory_space<vmem>>, vector<1x1x32xf32>
    %12 = vector.shape_cast %11 : vector<1x1x32xf32> to vector<1x32xf32>
    %c0_17 = arith.constant 0 : index
    %c0_18 = arith.constant 0 : index
    %c0_19 = arith.constant 0 : index
    %13 = vector.load %arg1[%c0_17, %c0_18, %c0_19] : memref<2x8x16xf32, #tpu.memory_space<vmem>>, vector<1x8x16xf32>
    %14 = vector.shape_cast %13 : vector<1x8x16xf32> to vector<8x16xf32>
    %cst = arith.constant dense<0.000000e+00> : vector<8x32xf32>
    %15 = tpu.matmul %14, %2, %cst {dimension_numbers = #tpu.dot_dimension_numbers<[1], [0], [0], [1], [0, 0, 1, 1], [], []>} : vector<8x16xf32>, vector<16x32xf32>, vector<8x32xf32> -> vector<8x32xf32>
    %16 = vector.broadcast %8 : vector<1x32xf32> to vector<8x32xf32>
    %17 = arith.addf %15, %16 : vector<8x32xf32>
    %cst_20 = arith.constant dense<0.000000e+00> : vector<8x32xf32>
    %18 = tpu.matmul %14, %4, %cst_20 {dimension_numbers = #tpu.dot_dimension_numbers<[1], [0], [0], [1], [0, 0, 1, 1], [], []>} : vector<8x16xf32>, vector<16x32xf32>, vector<8x32xf32> -> vector<8x32xf32>
    %19 = vector.broadcast %10 : vector<1x32xf32> to vector<8x32xf32>
    %20 = arith.addf %18, %19 : vector<8x32xf32>
    %cst_21 = arith.constant dense<0.000000e+00> : vector<8x32xf32>
    %21 = tpu.matmul %14, %6, %cst_21 {dimension_numbers = #tpu.dot_dimension_numbers<[1], [0], [0], [1], [0, 0, 1, 1], [], []>} : vector<8x16xf32>, vector<16x32xf32>, vector<8x32xf32> -> vector<8x32xf32>
    %22 = vector.broadcast %12 : vector<1x32xf32> to vector<8x32xf32>
    %23 = arith.addf %21, %22 : vector<8x32xf32>
    %cst_22 = arith.constant dense<0.000000e+00> : vector<8x8xf32>
    %24 = tpu.matmul %17, %20, %cst_22 {dimension_numbers = #tpu.dot_dimension_numbers<[1], [1], [0], [0], [0, 0, 1, 0], [], []>} : vector<8x32xf32>, vector<8x32xf32>, vector<8x8xf32> -> vector<8x8xf32>
    %25 = arith.addf %24, %0 : vector<8x8xf32>
    %cst_23 = arith.constant dense<0xFF800000> : vector<8xf32>
    %26 = vector.multi_reduction <maximumf>, %25, %cst_23 [1] : vector<8x8xf32> to vector<8xf32>
    %27 = vector.shape_cast %26 : vector<8xf32> to vector<8x1xf32>
    %28 = vector.broadcast %27 : vector<8x1xf32> to vector<8x8xf32>
    %29 = arith.subf %25, %28 : vector<8x8xf32>
    %30 = math.exp %29 : vector<8x8xf32>
    %cst_24 = arith.constant dense<0.000000e+00> : vector<8xf32>
    %31 = vector.multi_reduction <add>, %30, %cst_24 [1] : vector<8x8xf32> to vector<8xf32>
    %32 = vector.shape_cast %31 : vector<8xf32> to vector<8x1xf32>
    %cst_25 = arith.constant dense<0.000000e+00> : vector<8x32xf32>
    %33 = tpu.matmul %30, %23, %cst_25 {dimension_numbers = #tpu.dot_dimension_numbers<[1], [0], [0], [1], [0, 0, 1, 1], [], []>} : vector<8x8xf32>, vector<8x32xf32>, vector<8x32xf32> -> vector<8x32xf32>
    %34 = tpu.reciprocal %32 {approx = true} : vector<8x1xf32> -> vector<8x1xf32>
    %35 = vector.broadcast %34 : vector<8x1xf32> to vector<8x32xf32>
    %36 = arith.mulf %33, %35 : vector<8x32xf32>
    %c0_26 = arith.constant 0 : index
    %c0_27 = arith.constant 0 : index
    %c0_28 = arith.constant 0 : index
    %37 = vector.load %arg5[%c0_26, %c0_27, %c0_28] : memref<2x8x32xf32, #tpu.memory_space<vmem>>, vector<1x8x32xf32>
    %38 = vector.shape_cast %37 : vector<1x8x32xf32> to vector<8x32xf32>
    %39 = vector.shape_cast %36 : vector<8x32xf32> to vector<1x8x32xf32>
    tpu.vector_store %arg5[%c0_26, %c0_27, %c0_28], %39 {strides = array<i32>} : memref<2x8x32xf32, #tpu.memory_space<vmem>>, vector<1x8x32xf32>,
    %c1_29 = arith.constant 1 : index
    %c0_30 = arith.constant 0 : index
    %c0_31 = arith.constant 0 : index
    %40 = vector.load %arg1[%c1_29, %c0_30, %c0_31] : memref<2x8x16xf32, #tpu.memory_space<vmem>>, vector<1x8x16xf32>
    %41 = vector.shape_cast %40 : vector<1x8x16xf32> to vector<8x16xf32>
    %cst_32 = arith.constant dense<0.000000e+00> : vector<8x32xf32>
    %42 = tpu.matmul %41, %2, %cst_32 {dimension_numbers = #tpu.dot_dimension_numbers<[1], [0], [0], [1], [0, 0, 1, 1], [], []>} : vector<8x16xf32>, vector<16x32xf32>, vector<8x32xf32> -> vector<8x32xf32>
    %43 = vector.broadcast %8 : vector<1x32xf32> to vector<8x32xf32>
    %44 = arith.addf %42, %43 : vector<8x32xf32>
    %cst_33 = arith.constant dense<0.000000e+00> : vector<8x32xf32>
    %45 = tpu.matmul %41, %4, %cst_33 {dimension_numbers = #tpu.dot_dimension_numbers<[1], [0], [0], [1], [0, 0, 1, 1], [], []>} : vector<8x16xf32>, vector<16x32xf32>, vector<8x32xf32> -> vector<8x32xf32>
    %46 = vector.broadcast %10 : vector<1x32xf32> to vector<8x32xf32>
    %47 = arith.addf %45, %46 : vector<8x32xf32>
    %cst_34 = arith.constant dense<0.000000e+00> : vector<8x32xf32>
    %48 = tpu.matmul %41, %6, %cst_34 {dimension_numbers = #tpu.dot_dimension_numbers<[1], [0], [0], [1], [0, 0, 1, 1], [], []>} : vector<8x16xf32>, vector<16x32xf32>, vector<8x32xf32> -> vector<8x32xf32>
    %49 = vector.broadcast %12 : vector<1x32xf32> to vector<8x32xf32>
    %50 = arith.addf %48, %49 : vector<8x32xf32>
    %cst_35 = arith.constant dense<0.000000e+00> : vector<8x8xf32>
    %51 = tpu.matmul %44, %47, %cst_35 {dimension_numbers = #tpu.dot_dimension_numbers<[1], [1], [0], [0], [0, 0, 1, 0], [], []>} : vector<8x32xf32>, vector<8x32xf32>, vector<8x8xf32> -> vector<8x8xf32>
    %52 = arith.addf %51, %0 : vector<8x8xf32>
    %cst_36 = arith.constant dense<0xFF800000> : vector<8xf32>
    %53 = vector.multi_reduction <maximumf>, %52, %cst_36 [1] : vector<8x8xf32> to vector<8xf32>
    %54 = vector.shape_cast %53 : vector<8xf32> to vector<8x1xf32>
    %55 = vector.broadcast %54 : vector<8x1xf32> to vector<8x8xf32>
    %56 = arith.subf %52, %55 : vector<8x8xf32>
    %57 = math.exp %56 : vector<8x8xf32>
    %cst_37 = arith.constant dense<0.000000e+00> : vector<8xf32>
    %58 = vector.multi_reduction <add>, %57, %cst_37 [1] : vector<8x8xf32> to vector<8xf32>
    %59 = vector.shape_cast %58 : vector<8xf32> to vector<8x1xf32>
    %cst_38 = arith.constant dense<0.000000e+00> : vector<8x32xf32>
    %60 = tpu.matmul %57, %50, %cst_38 {dimension_numbers = #tpu.dot_dimension_numbers<[1], [0], [0], [1], [0, 0, 1, 1], [], []>} : vector<8x8xf32>, vector<8x32xf32>, vector<8x32xf32> -> vector<8x32xf32>
    %61 = tpu.reciprocal %59 {approx = true} : vector<8x1xf32> -> vector<8x1xf32>
    %62 = vector.broadcast %61 : vector<8x1xf32> to vector<8x32xf32>
    %63 = arith.mulf %60, %62 : vector<8x32xf32>
    %c1_39 = arith.constant 1 : index
    %c0_40 = arith.constant 0 : index
    %c0_41 = arith.constant 0 : index
    %64 = vector.load %arg5[%c1_39, %c0_40, %c0_41] : memref<2x8x32xf32, #tpu.memory_space<vmem>>, vector<1x8x32xf32>
    %65 = vector.shape_cast %64 : vector<1x8x32xf32> to vector<8x32xf32>
    %66 = vector.shape_cast %63 : vector<8x32xf32> to vector<1x8x32xf32>
    tpu.vector_store %arg5[%c1_39, %c0_40, %c0_41], %66 {strides = array<i32>} : memref<2x8x32xf32, #tpu.memory_space<vmem>>, vector<1x8x32xf32>,
    return
  }
  func.func @transform_0(%arg0: i32) -> (i32, i32, i32) {
    %c0_i32 = arith.constant 0 : i32
    %c0_i32_0 = arith.constant 0 : i32
    %c0_i32_1 = arith.constant 0 : i32
    return %arg0, %c0_i32, %c0_i32_0 : i32, i32, i32
  }
  func.func @transform_1(%arg0: i32) -> (i32, i32, i32) {
    %c0_i32 = arith.constant 0 : i32
    %c0_i32_0 = arith.constant 0 : i32
    %c0_i32_1 = arith.constant 0 : i32
    %c0_i32_2 = arith.constant 0 : i32
    return %c0_i32, %c0_i32_0, %c0_i32_1 : i32, i32, i32
  }
  func.func @transform_2(%arg0: i32) -> (i32, i32, i32) {
    %c0_i32 = arith.constant 0 : i32
    %c0_i32_0 = arith.constant 0 : i32
    %c0_i32_1 = arith.constant 0 : i32
    %c0_i32_2 = arith.constant 0 : i32
    return %c0_i32, %c0_i32_0, %c0_i32_1 : i32, i32, i32
  }
  func.func @transform_3(%arg0: i32) -> (i32, i32) {
    %c0_i32 = arith.constant 0 : i32
    %c0_i32_0 = arith.constant 0 : i32
    %c0_i32_1 = arith.constant 0 : i32
    return %c0_i32, %c0_i32_0 : i32, i32
  }
  func.func @transform_4(%arg0: i32) -> (i32, i32, i32) {
    %c0_i32 = arith.constant 0 : i32
    %c0_i32_0 = arith.constant 0 : i32
    %c0_i32_1 = arith.constant 0 : i32
    return %arg0, %c0_i32, %c0_i32_0 : i32, i32, i32
  }
}

</mosaic_0001>

<bundles_post_ra>
// kernel: tpu_custom_call.1
= control target key start
LH: loop header
LB: loop body
LE: loop exit
PB: predicated region body
PF: predicated region fallthrough
CT: control target
= control target key end

     0   :  { %9 = vsyncpa [#allocation3], 0  ;;  %s1202_s0 = inlined_call_operand.hbm [shape: f32[2,8,16], index: 0, kind: input, shape index: {}]   ;;  %s1203_s1 = inlined_call_operand.hbm [shape: f32[3,16,32], index: 1, kind: input, shape index: {}]   ;;  %s1204_s2 = inlined_call_operand.vmem [shape: f32[3,1,32], index: 2, kind: input, shape index: {}]   ;;  %s1205_s3 = inlined_call_operand.hbm [shape: f32[8,8], index: 3, kind: input, shape index: {}]   ;;  %s1206_s4 = inlined_call_operand.hbm [shape: f32[2,8,32], index: 4, kind: output, shape index: {}]  }
   0x1   :  { %10 = vsyncpa [#allocation6], 0 }
   0x2   :  { %11 = vsyncpa [#allocation4], 0  ;;  %s1069_s15 = smov [#allocation5]   ;;  %s1070_s17 = smov [#allocation2]  }
   0x3   :  { %s29_s16 = sshll.u32 %s1069_s15, 4  ;;  %s17_s18 = sshll.u32 %s1070_s17, 4  ;;  %s30_s16 = int_to_ptr.vmem [resolvable:$true] %s29_s16  ;;  %s18_s18 = int_to_ptr.vmem [resolvable:$true] %s17_s18 }
   0x4   :  { %s991_s19 = scalar_lea.vmem %s30_s16, 768  ;;  %p996_p1 = scmp.lt.s32.totalorder %s30_s16, %s30_s16 }
   0x5   :  { %p992_p0 = scmp.ne.s32.totalorder %s30_s16, %s991_s19  ;;  %p997_p2 = scmp.lt.s32.totalorder %s991_s19, %s991_s19 }
   0x7   :  { %p998_p3 = por %p997_p2, %p996_p1 }
   0x9   :  { %p999_p4 = pnand %p998_p3, %p992_p0 }
   0xb   :  { %1002 = shalt.err (!%p999_p4)
}
   0xc   :  { %s1071_s20 = smov 128   ;;  %s1072_s21 = smov 8  }
   0xd   :  { %35 = dma.hbm_to_vmem [thread:$0]  %s1203_s1, 768, %s30_s16, [#allocation6], %s1071_s20, %s1071_s20, %s1072_s21  }
   0xe   :  { %s1011_s24 = scalar_lea.vmem %s18_s18, 256  ;;  %p1016_p6 = scmp.lt.s32.totalorder %s18_s18, %s18_s18 }
   0xf   :  { %p1012_p5 = scmp.ne.s32.totalorder %s18_s18, %s1011_s24  ;;  %p1017_p7 = scmp.lt.s32.totalorder %s1011_s24, %s1011_s24 }
  0x11   :  { %p1018_p8 = por %p1017_p7, %p1016_p6 }
  0x13   :  { %p1019_p9 = pnand %p1018_p8, %p1012_p5 }
  0x15   :  { %1022 = shalt.err (!%p1019_p9)
}
  0x16   :  { %23 = dma.hbm_to_vmem [thread:$0]  %s1202_s0, 256, %s18_s18, [#allocation3], %s1071_s20, %s1071_s20, %s1072_s21  }
  0x17   :  { %s1073_s27 = smov [#allocation7]  }
  0x18   :  { %s44_s28 = sshll.u32 %s1073_s27, 4  ;;  %s45_s28 = int_to_ptr.vmem [resolvable:$true] %s44_s28 }
  0x19   :  { %s1031_s29 = scalar_lea.vmem %s45_s28, 128  ;;  %p1036_p11 = scmp.lt.s32.totalorder %s45_s28, %s45_s28 }
  0x1a   :  { %p1032_p10 = scmp.ne.s32.totalorder %s45_s28, %s1031_s29  ;;  %p1037_p12 = scmp.lt.s32.totalorder %s1031_s29, %s1031_s29 }
  0x1c   :  { %p1038_p13 = por %p1037_p12, %p1036_p11 }
  0x1e   :  { %p1039_p0 = pnand %p1038_p13, %p1032_p10 }
  0x20   :  { %1042 = shalt.err (!%p1039_p0)
}
  0x21   :  { %47 = dma.hbm_to_vmem [thread:$0]  %s1205_s3, 128, %s45_s28, [#allocation6]  }
  0x22   :  { %1063 = dma.done.wait [#allocation3], 256  }
  0x23   :  { %1064 = vsyncadd [#allocation3], 4294967040 }
  0x24   :  { %1065 = dma.done.wait [#allocation6], 896  }
  0x25   :  { %1066 = vsyncadd [#allocation6], 4294966400  ;;  %v1074_v0 = vmov 0.0   ;;  %vm1075_vm0 = vmmov 0   ;;  %v1123_v1 = vld [vmem:[#allocation5 + $0x18] sm:$0xff]  ;;  %v59_v2 = vld [vmem:[#allocation5 + $0x8] sm:$0xff] }
  0x26   :  { %912 = vmatprep.subr.mxu1 %v1074_v0  ;;  %905 = vmatprep.subr.mxu0 %v1074_v0  ;;  %v1125_v3 = vld [vmem:[#allocation5 + $0x10] sm:$0xff]  ;;  %v58_v4 = vld [vmem:[#allocation5] sm:$0xff]  ;;  %vm78_vm1 = vcmask 130048   ;;  %v65_v6 = vld [vmem:[#allocation5 + $0x28] sm:$0xff]  ;;  %vm304_vm2 = vcmask 261120   ;;  %vm381_vm3 = vcmask 64512  }
  0x27   :  { %916 = vmatprep.mubr.msk.f32.mxu1 %vm1075_vm0, %v1074_v0  ;;  %909 = vmatprep.mubr.msk.f32.mxu0 %vm1075_vm0, %v1074_v0  ;;  %v71_v5 = vld [vmem:[#allocation2] sm:$0xff]  ;;  %v64_v7 = vld [vmem:[#allocation5 + $0x20] sm:$0xff]  ;;  %v468_v25 = vld [vmem:[#allocation2 + $0x8] sm:$0xff] }
  0x28   :  { %913 = vmatpush3.msra.mxu1 %v1123_v1  ;;  %906 = vmatpush3.msra.mxu0 %v59_v2  ;;  %v1147_v8 = vld [vmem:[%s1204_s2 + $0x1] ss:$0 sm:$0xff]  ;;  %v1152_v9 = vld [vmem:[%s1204_s2] ss:$0 sm:$0xff]  ;;  %v868_v21 = vld [vmem:[%s1204_s2 + $0x2] ss:$0 sm:$0xff] }
  0x29   :  { %914 = vmatprep.subr.mxu1 %v1074_v0  ;;  %907 = vmatprep.subr.mxu0 %v1074_v0  ;;  %v57_v16 = vld [vmem:[#allocation7] sm:$0xff]  ;;  %s1076_s2 = smov [#allocation8]  }
  0x2a   :  { %915 = vmatpush3.msra.mxu1 %v1125_v3  ;;  %908 = vmatpush3.msra.mxu0 %v58_v4  ;;  %s849_s9 = sshll.u32 %s1076_s2, 4  ;;  %s850_s9 = int_to_ptr.vmem [resolvable:$true] %s849_s9 }
  0x2b   :  { %917 = vmatmul.mubr.msk.f32.vlgmr.msra.gmra.mxu1 %vm78_vm1, %v71_v5  ;;  %910 = vmatmul.mubr.msk.f32.vlgmr.msra.gmra.mxu0 %vm78_vm1, %v71_v5  ;;  %s1043_s10 = scalar_lea.vmem %s850_s9, 256  ;;  %p1048_p2 = scmp.lt.s32.totalorder %s850_s9, %s850_s9 }
  0x2c   :  { %926 = vmatprep.subr.mxu1 %v1074_v0  ;;  %928 = vmatprep.mubr.msk.f32.mxu1 %vm1075_vm0, %v1074_v0  ;;  %p1044_p1 = scmp.ne.s32.totalorder %s850_s9, %s1043_s10  ;;  %p1049_p3 = scmp.lt.s32.totalorder %s1043_s10, %s1043_s10 }
  0x2d   :  { %919 = vmatprep.subr.mxu0 %v1074_v0  ;;  %923 = vmatprep.mubr.msk.f32.mxu0 %vm1075_vm0, %v1074_v0 }
  0x2e   :  { %920 = vmatpush3.msra.mxu0 %v65_v6  ;;  %p1050_p4 = por %p1049_p3, %p1048_p2 }
  0x2f   :  { %921 = vmatprep.subr.mxu0 %v1074_v0 }
  0x30   :  { %922 = vmatpush3.msra.mxu0 %v64_v7  ;;  %p1051_p5 = pnand %p1050_p4, %p1044_p1 }
  0x31   :  { %924 = vmatmul.mubr.msk.f32.vlgmr.msra.gmra.mxu0 %vm78_vm1, %v71_v5  ;;  %931 = vmatprep.subr.mxu0 %v1074_v0 }
  0x32   :  { %933 = vmatprep.mubr.msk.f32.mxu0 %vm1075_vm0, %v1074_v0 }
  0xeb   :  { %v224_v10 = vpop.f32.mrf.mxu1  ;;  %v148_v11 = vpop.f32.mrf.mxu0 }
  0xec   :  { %v225_v12 = vadd.f32 %v1147_v8, %v224_v10  ;;  %v149_v13 = vadd.f32 %v1152_v9, %v148_v11 }
  0xed   :  { %v918_v14 = vpop.f32.mrf.mxu1  ;;  %v911_v15 = vpop.f32.mrf.mxu0 }
  0xee   :  { %927 = vmatpush3.xpose.msk.msra.mxu1 %vm304_vm2, %v225_v12 }
  0xef   :  { %936 = vmatprep.subr.mxu1 %v1074_v0 }
  0xf1   :  { %929 = vmatmul.mubr.msk.f32.vlgmr.msra.gmra.mxu1 %vm304_vm2, %v149_v13  ;;  %v300_v22 = vpop.f32.mrf.mxu0 }
  0xf2   :  { %937 = vmatpush3.msra.mxu1 %v59_v2  ;;  %940 = vmatprep.mubr.msk.f32.mxu1 %vm1075_vm0, %v1074_v0  ;;  %v301_v23 = vadd.f32 %v868_v21, %v300_v22 }
  0xf3   :  { %938 = vmatprep.subr.mxu1 %v1074_v0  ;;  %v925_v24 = vpop.f32.mrf.mxu0 }
  0xf4   :  { %939 = vmatpush3.msra.mxu1 %v58_v4  ;;  %932 = vmatpush3.msra.mxu0 %v301_v23 }
  0xf5   :  { %950 = vmatprep.subr.mxu1 %v1074_v0  ;;  %943 = vmatprep.subr.mxu0 %v1074_v0 }
  0xf6   :  { %941 = vmatmul.mubr.msk.f32.vlgmr.msra.gmra.mxu1 %vm78_vm1, %v468_v25 }
  0xf7   :  { %951 = vmatpush3.msra.mxu1 %v65_v6  ;;  %954 = vmatprep.mubr.msk.f32.mxu1 %vm1075_vm0, %v1074_v0 }
  0xf8   :  { %952 = vmatprep.subr.mxu1 %v1074_v0 }
  0xf9   :  { %953 = vmatpush3.msra.mxu1 %v64_v7 }
  0xfa   :  { %955 = vmatmul.mubr.msk.f32.vlgmr.msra.gmra.mxu1 %vm78_vm1, %v468_v25  ;;  %962 = vmatprep.subr.mxu1 %v1074_v0 }
  0xfb   :  { %964 = vmatprep.mubr.msk.f32.mxu1 %vm1075_vm0, %v1074_v0 }
 0x1b1   :  { %v377_v17 = vpop.f32.mrf.mxu1 }
 0x1b2   :  { %v378_v18 = vadd.f32 %v377_v17, %v57_v16 }
 0x1b3   :  { %v930_v19 = vpop.f32.mrf.mxu1 }
 0x1b4   :  { %v382_v20 = vsel %vm381_vm3, %v378_v18, -inf }
 0x1b5   :  { %383 = vmax.xlane.f32.xlu0 %v382_v20 }
 0x1b6   :  { %v538_v31 = vpop.f32.mrf.mxu1 }
 0x1b7   :  { %v539_v40 = vadd.f32 %v1152_v9, %v538_v31 }
 0x1b8   :  { %v942_v32 = vpop.f32.mrf.mxu1 }
 0x1ba   :  { %v678_v46 = vpop.f32.mrf.mxu1 }
 0x1bb   :  { %v679_v47 = vadd.f32 %v868_v21, %v678_v46 }
 0x1bc   :  { %v956_v48 = vpop.f32.mrf.mxu1 }
 0x1bd   :  { %963 = vmatpush3.msra.mxu1 %v679_v47 }
 0x23e   :  { %v384_v26 = vpop.xlane.xlu0 %383 }
 0x23f   :  { %v385_v27 = vsub.f32 %v378_v18, %v384_v26 }
 0x241   :  { %v386_v28 = vmul.f32 1.442695, %v385_v27 }
 0x243   :  { %975 = vpow2.f32 %v386_v28 }
 0x250   :  { %v976_v29 = vpop.eup %975 }
 0x251   :  { %934 = vmatmul.mubr.msk.f32.vlgmr.msra.gmra.mxu0 %vm381_vm3, %v976_v29  ;;  %v388_v30 = vsel %vm381_vm3, %v976_v29, 0.0 }
 0x252   :  { %944 = vmatpush3.msra.mxu0 %v1123_v1  ;;  %389 = vadd.xlane.f32.xlu1 %v388_v30 }
 0x253   :  { %945 = vmatprep.subr.mxu0 %v1074_v0  ;;  %947 = vmatprep.mubr.msk.f32.mxu0 %vm1075_vm0, %v1074_v0 }
 0x254   :  { %946 = vmatpush3.msra.mxu0 %v1125_v3 }
 0x255   :  { %948 = vmatmul.mubr.msk.f32.vlgmr.msra.gmra.mxu0 %vm78_vm1, %v468_v25  ;;  %957 = vmatprep.subr.mxu0 %v1074_v0 }
 0x256   :  { %959 = vmatprep.mubr.msk.f32.mxu0 %vm1075_vm0, %v1074_v0 }
 0x2db   :  { %v390_v33 = vpop.xlane.xlu1 %389 }
 0x2dc   :  { %977 = vrcp.f32 %v390_v33 }
 0x2e9   :  { %v978_v34 = vpop.eup %977 }
 0x311   :  { %v460_v35 = vpop.f32.mrf.mxu0 }
 0x312   :  { %v465_v36 = vmul.f32 %v978_v34, %v460_v35 }
 0x313   :  { %v935_v37 = vpop.f32.mrf.mxu0 }
 0x314   :  { %466 = vst.msk [vmem:[#allocation8] sm:$0xff] %vm304_vm2, %v465_v36 }
 0x315   :  { %v608_v38 = vpop.f32.mrf.mxu0 }
 0x316   :  { %v609_v39 = vadd.f32 %v1147_v8, %v608_v38 }
 0x317   :  { %v949_v41 = vpop.f32.mrf.mxu0 }
 0x318   :  { %958 = vmatpush3.xpose.msk.msra.mxu0 %vm304_vm2, %v609_v39 }
 0x31b   :  { %960 = vmatmul.mubr.msk.f32.vlgmr.msra.gmra.mxu0 %vm304_vm2, %v539_v40 }
 0x3db   :  { %v754_v42 = vpop.f32.mrf.mxu0 }
 0x3dc   :  { %v755_v43 = vadd.f32 %v754_v42, %v57_v16 }
 0x3dd   :  { %v961_v44 = vpop.f32.mrf.mxu0 }
 0x3de   :  { %v758_v45 = vsel %vm381_vm3, %v755_v43, -inf }
 0x3df   :  { %759 = vmax.xlane.f32.xlu0 %v758_v45 }
 0x468   :  { %v760_v49 = vpop.xlane.xlu0 %759 }
 0x469   :  { %v761_v50 = vsub.f32 %v755_v43, %v760_v49 }
 0x46b   :  { %v762_v51 = vmul.f32 1.442695, %v761_v50 }
 0x46d   :  { %979 = vpow2.f32 %v762_v51 }
 0x47a   :  { %v980_v52 = vpop.eup %979 }
 0x47b   :  { %965 = vmatmul.mubr.msk.f32.vlgmr.msra.gmra.mxu1 %vm381_vm3, %v980_v52  ;;  %v764_v53 = vsel %vm381_vm3, %v980_v52, 0.0 }
 0x47c   :  { %765 = vadd.xlane.f32.xlu1 %v764_v53 }
 0x505   :  { %v766_v54 = vpop.xlane.xlu1 %765 }
 0x506   :  { %981 = vrcp.f32 %v766_v54 }
 0x513   :  { %v982_v55 = vpop.eup %981 }
 0x53b   :  { %v836_v56 = vpop.f32.mrf.mxu1 }
 0x53c   :  { %v841_v57 = vmul.f32 %v982_v55, %v836_v56 }
 0x53d   :  { %v966_v58 = vpop.f32.mrf.mxu1 }
 0x53e   :  { %843 = vst.msk [vmem:[#allocation8 + $0x8] sm:$0xff] %vm304_vm2, %v841_v57 }
 0x53f   :  { %1054 = shalt.err (!%p1051_p5)
}
 0x540   :  { %855 = dma.vmem_to_hbm [thread:$0]  %s850_s9, 256, %s1206_s4, [#allocation4], %s1071_s20, %s1071_s20, %s1072_s21  }
 0x541   :  { %1067 = dma.done.wait [#allocation4], 256  }
 0x542   :  { %1068 = vsyncadd [#allocation4], 4294967040 }
 0x543   :  { %859 = vsyncpa [#allocation3], 1 }
 0x544   :  { %860 = vsyncpa [#allocation6], 1 }
 0x545   :  { %861 = vsyncpa [#allocation4], 1 }

</bundles_post_ra>
